<compile_context>
chip_gen: v7x
topology: tpu7x:2x2x1
jax: 0.10.0
libtpu: 0.0.40
codegen_flags: <defaults>
</compile_context>

<pallas_src>
import math
from functools import lru_cache

import jax
import jax.numpy as jnp
from jax import lax
from jax.experimental import pallas as pl
from jax.experimental.pallas import tpu as pltpu


# =============================================================================
# Tiling heuristics
# =============================================================================

def _pick_tiles(B, O, KKC, N, x_itemsize, budget=16 << 20):
    """Pick (TB, TN): batch block and lane (N) tile.

    TN must be a multiple of 128 dividing N (or the full extent).  The
    double-buffered per-step working set is kept under `budget` bytes so the
    kernel pipelines on every TPU generation (v7x has only 64 MiB VMEM).
    """
    tb_candidates = [tb for tb in range(min(B, 8), 0, -1) if B % tb == 0]
    for TB in tb_candidates:
        per_lane = 2 * TB * (KKC * x_itemsize + O * 4)      # dbl-buffered in + out
        fixed = 2 * (O * KKC * 4 + TB * KKC * 4 + O * 4)    # weight, style, bias
        if N % 128 != 0:
            TN = N                                          # block must equal full dim
        else:
            TN = 128
            t = 128
            while t <= N:
                if N % t == 0 and t * per_lane + fixed <= budget:
                    TN = t
                t += 128
        if TN * per_lane + fixed <= budget or TB == 1:
            return TB, TN
    return 1, N


# =============================================================================
# Pallas kernel: modulated conv as (O, KKC) x (KKC, TN) matmul, fused bias
# =============================================================================

@lru_cache(maxsize=None)
def _modconv_call(B, O, KKC, N, demod, eps, x_dtype_name):
    """Factory for the style-modulated conv pallas_call.

    Inputs (in order):
      w:     (O, KKC)     f32 equalized base weight, KKC = k*k*C, (tap, c) order
      s:     (B, KKC)     f32 per-sample style, tiled k*k times along channels
      bias:  (O, 1)       f32 StyleConv bias (fused epilogue)
      x:     (B, KKC, N)  im2col patches (compute dtype)
    Output:
      o:     (B, O, N)    f32
    """
    x_dtype = jnp.dtype(x_dtype_name)
    TB, TN = _pick_tiles(B, O, KKC, N, x_dtype.itemsize)
    nB, nN = B // TB, N // TN

    def kernel(w_ref, s_ref, b_ref, x_ref, o_ref):
        w = w_ref[...]                                   # (O, KKC)  resident
        bias = b_ref[...]                                # (O, 1)    resident
        s_all = s_ref[...]                               # (TB, KKC)
        for bi in range(TB):                             # small static unroll
            # --- modulate / demodulate in f32 -------------------------------
            wm = w * s_all[bi:bi + 1, :]                 # (O, KKC)
            if demod:
                sig = jnp.sum(wm * wm, axis=1, keepdims=True) + eps
                wm = wm * lax.rsqrt(sig)
            # --- single large-K MXU matmul ----------------------------------
            acc = jnp.dot(wm.astype(x_dtype), x_ref[bi],
                          preferred_element_type=jnp.float32)   # (O, TN)
            # --- fused bias epilogue ----------------------------------------
            o_ref[bi] = acc + bias

    # Explicit VMEM limit with headroom (mandatory awareness on v7x's 64 MiB).
    per_lane = 2 * TB * (KKC * x_dtype.itemsize + O * 4)
    fixed = 2 * (O * KKC * 4 + TB * KKC * 4 + O * 4)
    ws = TN * per_lane + fixed
    vmem_limit = int(min(max(2 * ws + (4 << 20), 16 << 20), 48 << 20))

    return pl.pallas_call(
        kernel,
        out_shape=jax.ShapeDtypeStruct((B, O, N), jnp.float32),
        grid=(nB, nN),
        in_specs=[
            pl.BlockSpec((O, KKC), lambda b, n: (0, 0)),        # weight: resident
            pl.BlockSpec((TB, KKC), lambda b, n: (b, 0)),       # style per batch blk
            pl.BlockSpec((O, 1), lambda b, n: (0, 0)),          # bias: resident
            pl.BlockSpec((TB, KKC, TN), lambda b, n: (b, 0, n)),
        ],
        out_specs=pl.BlockSpec((TB, O, TN), lambda b, n: (b, 0, n)),
        compiler_params=pltpu.CompilerParams(
            dimension_semantics=("parallel", "parallel"),
            vmem_limit_bytes=vmem_limit),
    )


# =============================================================================
# JAX glue: im2col, style MLP, parameters
# =============================================================================

def _im2col_kkc(x, k, pad):
    """x: (B, C, H, W) -> (B, k*k*C, Ho*Wo) replicate-padded patches.

    Contraction index order is (tap, c) with tap = ky*k + kx — it matches the
    weight layout transpose(O, C, kh, kw) -> (O, kh, kw, C) -> (O, k*k*C).
    """
    if pad > 0:
        x = jnp.pad(x, ((0, 0), (0, 0), (pad, pad), (pad, pad)), mode='edge')
    B, C, Hp, Wp = x.shape
    Ho, Wo = Hp - k + 1, Wp - k + 1
    taps = []
    for dy in range(k):
        for dx in range(k):
            taps.append(x[:, :, dy:dy + Ho, dx:dx + Wo].reshape(B, C, Ho * Wo))
    return jnp.concatenate(taps, axis=1), Ho, Wo


def _eq_linear_apply(p, x):
    w = p['weight']['w'] * p['weight']['c']
    return x @ w.T + p['bias']


def _style_mlp(p, z):
    """MappingNetwork(d_latent, 2) followed by EqualizedLinear(d_latent, C)."""
    for layer in p['mapping']:
        z = _eq_linear_apply(layer['lin'], z)
        a = layer['prelu_a']
        z = jnp.where(z >= 0, z, a[None, :] * z)        # PReLU(planes)
    return _eq_linear_apply(p['to_in'], z)


def init_styleconv_params(key, d_latent, in_planes, out_planes, kernel_size):
    keys = list(jax.random.split(key, 12))

    def nk():
        return keys.pop(0)

    def eq_weight(shape):
        return {'w': jax.random.normal(nk(), shape, jnp.float32),
                'c': 1.0 / math.sqrt(math.prod(shape[1:]))}

    def eq_linear(n_in, n_out):
        return {'weight': eq_weight((n_out, n_in)),
                'bias': jax.random.normal(nk(), (n_out,), jnp.float32)}

    mapping = [{'lin': eq_linear(d_latent, d_latent),
                'prelu_a': jnp.full((d_latent,), 0.25, jnp.float32)}
               for _ in range(2)]
    return {
        'style': {'mapping': mapping, 'to_in': eq_linear(d_latent, in_planes)},
        'weight': eq_weight((out_planes, in_planes, kernel_size, kernel_size)),
        'bias': jax.random.normal(nk(), (out_planes,), jnp.float32),
        'k': kernel_size,
        'pad': (kernel_size - 1) // 2,
        'out': out_planes,
        'demod': True,
        'eps': 1e-8,
    }


# =============================================================================
# StyleConv forward (Pallas) and a pure-XLA reference
# =============================================================================

def style_conv_forward(params, x, z, compute_dtype=jnp.float32):
    """Pallas forward.  compute_dtype=jnp.bfloat16 halves patch HBM traffic
    (modulation/demod and accumulation remain f32)."""
    B, C, H, W = x.shape
    O, k, pad = params['out'], params['k'], params['pad']

    s = _style_mlp(params['style'], z)                              # (B, C)
    base = params['weight']['w'] * params['weight']['c']            # (O, C, k, k)
    w2d = jnp.transpose(base, (0, 2, 3, 1)).reshape(O, k * k * C)   # (O, KKC)
    patches, Ho, Wo = _im2col_kkc(x, k, pad)                        # (B, KKC, N)
    s_tiled = jnp.tile(s, (1, k * k)).astype(jnp.float32)           # (B, KKC)
    bias2d = params['bias'].reshape(O, 1).astype(jnp.float32)

    call = _modconv_call(B, O, k * k * C, Ho * Wo, bool(params['demod']),
                         float(params['eps']), jnp.dtype(compute_dtype).name)
    out = call(w2d.astype(jnp.float32), s_tiled, bias2d,
               patches.astype(compute_dtype))
    return out.reshape(B, O, Ho, Wo)


def style_conv_reference(params, x, z):
    """Pure-JAX reference matching the PyTorch module (grouped per-sample conv)."""
    s = _style_mlp(params['style'], z)                              # (B, C)
    w = params['weight']['w'] * params['weight']['c']               # (O, C, k, k)
    wm = w[None] * s[:, None, :, None, None]                        # (B, O, C, k, k)
    if params['demod']:
        sig = jnp.sum(wm * wm, axis=(2, 3, 4), keepdims=True) + params['eps']
        wm = wm * lax.rsqrt(sig)
    pad = params['pad']
    xp = x if pad == 0 else jnp.pad(
        x, ((0, 0), (0, 0), (pad, pad), (pad, pad)), mode='edge')

    def one(xi, wi):
        return lax.conv_general_dilated(
            xi[None], wi, window_strides=(1, 1), padding='VALID',
            dimension_numbers=('NCHW', 'OIHW', 'NCHW'),
            precision=lax.Precision.HIGHEST)[0]

    y = jax.vmap(one)(xp, wm)
    return y + params['bias'][None, :, None, None]


# =============================================================================
# main
# =============================================================================

if __name__ == "__main__":
    B, C_IN, C_OUT, H, W, D_LATENT = 2, 8, 16, 16, 16, 32

    key = jax.random.PRNGKey(0)
    kp3, kp1, kx, kz = jax.random.split(key, 4)
    params_k3 = init_styleconv_params(kp3, D_LATENT, C_IN, C_OUT, 3)
    params_k1 = init_styleconv_params(kp1, D_LATENT, C_IN, C_OUT, 1)

    x = jax.random.normal(kx, (B, C_IN, H, W), jnp.float32)
    z = jax.random.normal(kz, (B, D_LATENT), jnp.float32)

    fwd_k3 = jax.jit(lambda xx, zz: style_conv_forward(params_k3, xx, zz))
    fwd_k1 = jax.jit(lambda xx, zz: style_conv_forward(params_k1, xx, zz))

    y3 = fwd_k3(x, z)
    y1 = fwd_k1(x, z)
    jax.block_until_ready((y3, y1))

    r3 = style_conv_reference(params_k3, x, z)
    r1 = style_conv_reference(params_k1, x, z)

    assert y3.shape == (B, C_OUT, H, W), y3.shape
    assert y1.shape == (B, C_OUT, H, W), y1.shape
    assert bool(jnp.all(jnp.isfinite(y3))) and bool(jnp.all(jnp.isfinite(y1)))
    assert bool(jnp.allclose(y3, r3, rtol=1e-2, atol=2e-2)), \
        float(jnp.max(jnp.abs(y3 - r3)))
    assert bool(jnp.allclose(y1, r1, rtol=1e-2, atol=2e-2)), \
        float(jnp.max(jnp.abs(y1 - r1)))

    print("KERNEL_OK")
</pallas_src>

<mosaic_0001>
module attributes {stable_mosaic.version = 11 : i64} {
  func.func @kernel(%arg0: i32, %arg1: i32, %arg2: memref<16x72xf32, #tpu.memory_space<vmem>>, %arg3: memref<2x72xf32, #tpu.memory_space<vmem>>, %arg4: memref<16x1xf32, #tpu.memory_space<vmem>>, %arg5: memref<2x72x256xf32, #tpu.memory_space<vmem>>, %arg6: memref<2x16x256xf32, #tpu.memory_space<vmem>>) attributes {dimension_semantics = [#tpu.dimension_semantics<parallel>, #tpu.dimension_semantics<parallel>], iteration_bounds = array<i64: 1, 1>, scalar_prefetch = 0 : i64, scratch_operands = 0 : i64, tpu.core_type = #tpu.core_type<tc>, window_params = [{pipeline_mode = #tpu.pipeline_mode<synchronous>, transform_indices = @transform_0, window_bounds = array<i64: 16, 72>}, {transform_indices = @transform_1, window_bounds = array<i64: 2, 72>}, {pipeline_mode = #tpu.pipeline_mode<synchronous>, transform_indices = @transform_2, window_bounds = array<i64: 16, 1>}, {transform_indices = @transform_3, window_bounds = array<i64: 2, 72, 256>}, {transform_indices = @transform_4, window_bounds = array<i64: 2, 16, 256>}]} {
    %c0 = arith.constant 0 : index
    %c0_0 = arith.constant 0 : index
    %0 = vector.load %arg2[%c0, %c0_0] : memref<16x72xf32, #tpu.memory_space<vmem>>, vector<16x72xf32>
    %c0_1 = arith.constant 0 : index
    %c0_2 = arith.constant 0 : index
    %1 = vector.load %arg4[%c0_1, %c0_2] : memref<16x1xf32, #tpu.memory_space<vmem>>, vector<16x1xf32>
    %c0_3 = arith.constant 0 : index
    %c0_4 = arith.constant 0 : index
    %2 = vector.load %arg3[%c0_3, %c0_4] : memref<2x72xf32, #tpu.memory_space<vmem>>, vector<2x72xf32>
    %3 = vector.extract_strided_slice %2 {offsets = [0, 0], sizes = [1, 72], strides = [1, 1]} : vector<2x72xf32> to vector<1x72xf32>
    %4 = vector.broadcast %3 : vector<1x72xf32> to vector<16x72xf32>
    %5 = arith.mulf %0, %4 : vector<16x72xf32>
    %6 = arith.mulf %5, %5 : vector<16x72xf32>
    %cst = arith.constant dense<0.000000e+00> : vector<16xf32>
    %7 = vector.multi_reduction <add>, %6, %cst [1] : vector<16x72xf32> to vector<16xf32>
    %8 = vector.shape_cast %7 : vector<16xf32> to vector<16x1xf32>
    %cst_5 = arith.constant 9.99999993E-9 : f32
    %9 = vector.broadcast %cst_5 : f32 to vector<16x1xf32>
    %10 = arith.addf %8, %9 : vector<16x1xf32>
    %11 = math.rsqrt %10 : vector<16x1xf32>
    %12 = vector.broadcast %11 : vector<16x1xf32> to vector<16x72xf32>
    %13 = arith.mulf %5, %12 : vector<16x72xf32>
    %c0_6 = arith.constant 0 : index
    %c0_7 = arith.constant 0 : index
    %c0_8 = arith.constant 0 : index
    %14 = vector.load %arg5[%c0_6, %c0_7, %c0_8] : memref<2x72x256xf32, #tpu.memory_space<vmem>>, vector<1x72x256xf32>
    %15 = vector.shape_cast %14 : vector<1x72x256xf32> to vector<72x256xf32>
    %cst_9 = arith.constant dense<0.000000e+00> : vector<16x256xf32>
    %16 = tpu.matmul %13, %15, %cst_9 {dimension_numbers = #tpu.dot_dimension_numbers<[1], [0], [0], [1], [0, 0, 1, 1], [], []>} : vector<16x72xf32>, vector<72x256xf32>, vector<16x256xf32> -> vector<16x256xf32>
    %17 = vector.broadcast %1 : vector<16x1xf32> to vector<16x256xf32>
    %18 = arith.addf %16, %17 : vector<16x256xf32>
    %c0_10 = arith.constant 0 : index
    %c0_11 = arith.constant 0 : index
    %c0_12 = arith.constant 0 : index
    %19 = vector.load %arg6[%c0_10, %c0_11, %c0_12] : memref<2x16x256xf32, #tpu.memory_space<vmem>>, vector<1x16x256xf32>
    %20 = vector.shape_cast %19 : vector<1x16x256xf32> to vector<16x256xf32>
    %21 = vector.shape_cast %18 : vector<16x256xf32> to vector<1x16x256xf32>
    tpu.vector_store %arg6[%c0_10, %c0_11, %c0_12], %21 {strides = array<i32>} : memref<2x16x256xf32, #tpu.memory_space<vmem>>, vector<1x16x256xf32>,
    %22 = vector.extract_strided_slice %2 {offsets = [1, 0], sizes = [1, 72], strides = [1, 1]} : vector<2x72xf32> to vector<1x72xf32>
    %23 = vector.broadcast %22 : vector<1x72xf32> to vector<16x72xf32>
    %24 = arith.mulf %0, %23 : vector<16x72xf32>
    %25 = arith.mulf %24, %24 : vector<16x72xf32>
    %cst_13 = arith.constant dense<0.000000e+00> : vector<16xf32>
    %26 = vector.multi_reduction <add>, %25, %cst_13 [1] : vector<16x72xf32> to vector<16xf32>
    %27 = vector.shape_cast %26 : vector<16xf32> to vector<16x1xf32>
    %cst_14 = arith.constant 9.99999993E-9 : f32
    %28 = vector.broadcast %cst_14 : f32 to vector<16x1xf32>
    %29 = arith.addf %27, %28 : vector<16x1xf32>
    %30 = math.rsqrt %29 : vector<16x1xf32>
    %31 = vector.broadcast %30 : vector<16x1xf32> to vector<16x72xf32>
    %32 = arith.mulf %24, %31 : vector<16x72xf32>
    %c1 = arith.constant 1 : index
    %c0_15 = arith.constant 0 : index
    %c0_16 = arith.constant 0 : index
    %33 = vector.load %arg5[%c1, %c0_15, %c0_16] : memref<2x72x256xf32, #tpu.memory_space<vmem>>, vector<1x72x256xf32>
    %34 = vector.shape_cast %33 : vector<1x72x256xf32> to vector<72x256xf32>
    %cst_17 = arith.constant dense<0.000000e+00> : vector<16x256xf32>
    %35 = tpu.matmul %32, %34, %cst_17 {dimension_numbers = #tpu.dot_dimension_numbers<[1], [0], [0], [1], [0, 0, 1, 1], [], []>} : vector<16x72xf32>, vector<72x256xf32>, vector<16x256xf32> -> vector<16x256xf32>
    %36 = vector.broadcast %1 : vector<16x1xf32> to vector<16x256xf32>
    %37 = arith.addf %35, %36 : vector<16x256xf32>
    %c1_18 = arith.constant 1 : index
    %c0_19 = arith.constant 0 : index
    %c0_20 = arith.constant 0 : index
    %38 = vector.load %arg6[%c1_18, %c0_19, %c0_20] : memref<2x16x256xf32, #tpu.memory_space<vmem>>, vector<1x16x256xf32>
    %39 = vector.shape_cast %38 : vector<1x16x256xf32> to vector<16x256xf32>
    %40 = vector.shape_cast %37 : vector<16x256xf32> to vector<1x16x256xf32>
    tpu.vector_store %arg6[%c1_18, %c0_19, %c0_20], %40 {strides = array<i32>} : memref<2x16x256xf32, #tpu.memory_space<vmem>>, vector<1x16x256xf32>,
    return
  }
  func.func @transform_0(%arg0: i32, %arg1: i32) -> (i32, i32) {
    %c0_i32 = arith.constant 0 : i32
    %c0_i32_0 = arith.constant 0 : i32
    %c0_i32_1 = arith.constant 0 : i32
    return %c0_i32, %c0_i32_0 : i32, i32
  }
  func.func @transform_1(%arg0: i32, %arg1: i32) -> (i32, i32) {
    %c0_i32 = arith.constant 0 : i32
    %c0_i32_0 = arith.constant 0 : i32
    return %arg0, %c0_i32 : i32, i32
  }
  func.func @transform_2(%arg0: i32, %arg1: i32) -> (i32, i32) {
    %c0_i32 = arith.constant 0 : i32
    %c0_i32_0 = arith.constant 0 : i32
    %c0_i32_1 = arith.constant 0 : i32
    return %c0_i32, %c0_i32_0 : i32, i32
  }
  func.func @transform_3(%arg0: i32, %arg1: i32) -> (i32, i32, i32) {
    %c0_i32 = arith.constant 0 : i32
    %c0_i32_0 = arith.constant 0 : i32
    return %arg0, %c0_i32, %arg1 : i32, i32, i32
  }
  func.func @transform_4(%arg0: i32, %arg1: i32) -> (i32, i32, i32) {
    %c0_i32 = arith.constant 0 : i32
    %c0_i32_0 = arith.constant 0 : i32
    return %arg0, %c0_i32, %arg1 : i32, i32, i32
  }
}

</mosaic_0001>

<bundles_post_ra>
// kernel: tile.9
= control target key start
LH: loop header
LB: loop body
LE: loop exit
PB: predicated region body
PF: predicated region fallthrough
CT: control target
= control target key end

     0   :  { %s7_s6 = smov 3  ;;  %s21_s9 = smov 3  ;;  %vm4_vm0 = vcmask 64512   ;;  %vm11_vm1 = vcmask 589312   ;;  %vm18_vm2 = vcmask 523712   ;;  %vm25_vm3 = vcmask 458112   ;;  %s132_s0 = inlined_call_operand.vmem [shape: f32[2,9,8], index: 0, kind: input, shape index: {}]   ;;  %s133_s1 = inlined_call_operand.vmem [shape: f32[2,72], index: 1, kind: output, shape index: {}]  }
   0x1   :  { %v68_v0 = vld [vmem:[%s132_s0 + $0x8] ss:$16 sm:%s7_s6]   ;;  %s84_s10 = smov 64   ;;  %v70_v1 = vld [vmem:[%s132_s0 + $0x6] ss:$16 sm:%s21_s9]   ;;  %s14_s13 = smov 3 }
   0x2   :  { %9 = vrot.lane.b32.xlu0 %v68_v0, %s84_s10  ;;  %s85_s14 = smov 48   ;;  %v69_v2 = vld [vmem:[%s132_s0 + $0x7] ss:$16 sm:%s14_s13]   ;;  %s28_s17 = smov 3  ;;  %vm32_vm4 = vcmask 392512   ;;  %vm39_vm5 = vcmask 326912  }
   0x3   :  { %23 = vrot.lane.b32.xlu1 %v70_v1, %s85_s14  ;;  %v71_v3 = vld [vmem:[%s132_s0 + $0x5] ss:$16 sm:%s28_s17]   ;;  %s35_s20 = smov 3  ;;  %s42_s21 = smov 3  ;;  %vm46_vm6 = vcmask 261312   ;;  %vm53_vm7 = vcmask 195712  }
   0x4   :  { %s86_s22 = smov 56   ;;  %s87_s23 = smov 40   ;;  %v72_v4 = vld [vmem:[%s132_s0 + $0x4] ss:$16 sm:%s35_s20]   ;;  %v73_v5 = vld [vmem:[%s132_s0 + $0x3] ss:$16 sm:%s42_s21]  }
   0x5   :  { %s49_s28 = smov 3  ;;  %s2_s29 = smov 3  ;;  %vm60_vm8 = vcmask 130112  }
   0x6   :  { %16 = vrot.lane.b32.xlu0 %v69_v2, %s86_s22  ;;  %s56_s30 = smov 3  ;;  %v3_v6 = vld [vmem:[%s132_s0] ss:$16 sm:%s2_s29]   ;;  %s88_s4 = smov 32  }
   0x7   :  { %30 = vrot.lane.b32.xlu1 %v71_v3, %s87_s23  ;;  %5 = vst.msk [vmem:[#allocation0] sm:$0x3] %vm4_vm0, %v3_v6   ;;  %s89_s5 = smov 24   ;;  %v74_v7 = vld [vmem:[%s132_s0 + $0x2] ss:$16 sm:%s49_s28]   ;;  %s91_s10 = smov 8  }
   0x8   :  { %v75_v8 = vld [vmem:[%s132_s0 + $0x1] ss:$16 sm:%s56_s30]   ;;  %s90_s0 = smov 16  }
   0xa   :  { %37 = vrot.lane.b32.xlu0 %v72_v4, %s88_s4 }
   0xb   :  { %44 = vrot.lane.b32.xlu1 %v73_v5, %s89_s5 }
   0xe   :  { %51 = vrot.lane.b32.xlu0 %v74_v7, %s90_s0 }
   0xf   :  { %58 = vrot.lane.b32.xlu1 %v75_v8, %s91_s10 }
  0x74   :  { %v10_v9 = vpop.permute.xlu0 %9  }
  0x75   :  { %12 = vst.msk [vmem:[#allocation0] sm:$0x3] %vm11_vm1, %v10_v9   ;;  %v24_v10 = vpop.permute.xlu1 %23  }
  0x78   :  { %v17_v11 = vpop.permute.xlu0 %16  }
  0x79   :  { %19 = vst.msk [vmem:[#allocation0] sm:$0x3] %vm18_vm2, %v17_v11   ;;  %v31_v12 = vpop.permute.xlu1 %30  }
  0x7a   :  { %26 = vst.msk [vmem:[#allocation0] sm:$0x3] %vm25_vm3, %v24_v10  }
  0x7b   :  { %33 = vst.msk [vmem:[#allocation0] sm:$0x3] %vm32_vm4, %v31_v12  }
  0x7c   :  { %v38_v13 = vpop.permute.xlu0 %37  }
  0x7d   :  { %40 = vst.msk [vmem:[#allocation0] sm:$0x3] %vm39_vm5, %v38_v13   ;;  %v45_v14 = vpop.permute.xlu1 %44  }
  0x7e   :  { %47 = vst.msk [vmem:[#allocation0] sm:$0x3] %vm46_vm6, %v45_v14  }
  0x80   :  { %v52_v15 = vpop.permute.xlu0 %51  }
  0x81   :  { %54 = vst.msk [vmem:[#allocation0] sm:$0x3] %vm53_vm7, %v52_v15   ;;  %v59_v16 = vpop.permute.xlu1 %58  }
  0x82   :  { %61 = vst.msk [vmem:[#allocation0] sm:$0x3] %vm60_vm8, %v59_v16  }
  0x89   :  { %v65_v17 = vld [vmem:[#allocation0] sm:$0x3] }
  0x8a   :  { %67 = vst [vmem:[%s133_s1] sm:$0x3] %v65_v17 }

// kernel: _lambda_.1
= control target key start
LH: loop header
LB: loop body
LE: loop exit
PB: predicated region body
PF: predicated region fallthrough
CT: control target
= control target key end

     0   :  { %v22_v0 = vlaneseq  ;;  %vm30_vm0 = vcmask 588800   ;;  %v359_v63 = vmov 0.0   ;;  %s561_s1 = inlined_call_operand.vmem [shape: f32[2,72], index: 1, kind: input, shape index: {}]   ;;  %s562_s3 = inlined_call_operand.vmem [shape: f32[2,72,256], index: 3, kind: input, shape index: {}]   ;;  %s563_s0 = inlined_call_operand.vmem [shape: f32[16,72], index: 0, kind: input, shape index: {}]   ;;  %s564_s2 = inlined_call_operand.vmem [shape: f32[16,1], index: 2, kind: input, shape index: {}]   ;;  %s565_s4 = inlined_call_operand.vmem [shape: f32[2,16,256], index: 4, kind: output, shape index: {}]  }
   0x1   :  { %v44_v2 = vld [vmem:[%s562_s3 + $0x8] sm:$0xff]  ;;  %v46_v3 = vld [vmem:[%s562_s3 + $0x18] sm:$0xff]  ;;  %v43_v4 = vld [vmem:[%s562_s3] sm:$0xff]  ;;  %141 = vmatprep.mubr.f32.mxu0 %v359_v63  ;;  %267 = vmatprep.mubr.f32.mxu1 %v359_v63 }
   0x2   :  { %v23_v1 = vshrl.u32 %v22_v0, 7  ;;  %v21_v5 = vld [vmem:[%s561_s1] sm:$0x3]  ;;  %v315_v6 = vpack.c.bf16 %v46_v3, %v44_v2  ;;  %v45_v7 = vld [vmem:[%s562_s3 + $0x10] sm:$0xff]  ;;  %v18_v12 = vld [vmem:[%s563_s0 + $0x8] sm:$0xff] }
   0x3   :  { %v317_v10 = vpack.c.bf16 %v45_v7, %v43_v4  ;;  %v17_v11 = vld [vmem:[%s563_s0] sm:$0xff]  ;;  %v48_v27 = vld [vmem:[%s562_s3 + $0x28] sm:$0xff]  ;;  %v50_v28 = vld [vmem:[%s562_s3 + $0x38] sm:$0xff] }
   0x4   :  { %v24_v8 = vsub.s32 0, %v23_v1  ;;  %v160_v9 = vsub.s32 1, %v23_v1  ;;  %316 = vmatprep.subr.bf16.mxu0 %v315_v6  ;;  %v292_v29 = vld [vmem:[%s562_s3 + $0x98] sm:$0xff]  ;;  %v319_v30 = vpack.c.bf16 %v50_v28, %v48_v27  ;;  %v294_v31 = vld [vmem:[%s562_s3 + $0xa8] sm:$0xff]  ;;  %v47_v32 = vld [vmem:[%s562_s3 + $0x20] sm:$0xff] }
   0x5   :  { %318 = vmatpush1.bf16.msra.mxu0 %v317_v10  ;;  %v49_v33 = vld [vmem:[%s562_s3 + $0x30] sm:$0xff]  ;;  %v331_v34 = vpack.c.bf16 %v294_v31, %v292_v29  ;;  %v293_v37 = vld [vmem:[%s562_s3 + $0xa0] sm:$0xff]  ;;  %v52_v39 = vld [vmem:[%s562_s3 + $0x48] sm:$0xff]  ;;  %v360_v10 = vmov 0  }
   0x6   :  { %v25_v13 = vrot.slane %v21_v5, %v24_v8  ;;  %v161_v14 = vrot.slane %v21_v5, %v160_v9  ;;  %v321_v35 = vpack.c.bf16 %v49_v33, %v47_v32  ;;  %v291_v36 = vld [vmem:[%s562_s3 + $0x90] sm:$0xff]  ;;  %320 = vmatprep.subr.bf16.mxu0 %v319_v30  ;;  %v54_v40 = vld [vmem:[%s562_s3 + $0x58] sm:$0xff]  ;;  %v298_v43 = vld [vmem:[%s562_s3 + $0xc8] sm:$0xff]  ;;  %349 = vset.pattern.permute.xlu0 %v360_v10 }
   0x7   :  { %v333_v38 = vpack.c.bf16 %v293_v37, %v291_v36  ;;  %332 = vmatprep.subr.bf16.mxu1 %v331_v34  ;;  %v296_v41 = vld [vmem:[%s562_s3 + $0xb8] sm:$0xff]  ;;  %v323_v42 = vpack.c.bf16 %v54_v40, %v52_v39  ;;  %v51_v44 = vld [vmem:[%s562_s3 + $0x40] sm:$0xff]  ;;  %v53_v45 = vld [vmem:[%s562_s3 + $0x50] sm:$0xff]  ;;  %350 = vset.pattern.permute.xlu1 %v360_v10 }
   0x8   :  { %v407_v15 = vmul.f32 %v25_v13, %v17_v11  ;;  %v409_v16 = vmul.f32 %v25_v13, %v18_v12  ;;  %v411_v17 = vmul.f32 %v161_v14, %v17_v11  ;;  %v413_v18 = vmul.f32 %v161_v14, %v18_v12  ;;  %v295_v48 = vld [vmem:[%s562_s3 + $0xb0] sm:$0xff]  ;;  %v297_v49 = vld [vmem:[%s562_s3 + $0xc0] sm:$0xff]  ;;  %v56_v51 = vld [vmem:[%s562_s3 + $0x68] sm:$0xff] }
   0x9   :  { %322 = vmatpush1.bf16.msra.mxu0 %v321_v35  ;;  %334 = vmatpush1.bf16.msra.mxu1 %v333_v38  ;;  %v335_v46 = vpack.c.bf16 %v298_v43, %v296_v41  ;;  %v325_v47 = vpack.c.bf16 %v53_v45, %v51_v44  ;;  %v337_v50 = vpack.c.bf16 %v297_v49, %v295_v48  ;;  %v58_v52 = vld [vmem:[%s562_s3 + $0x78] sm:$0xff]  ;;  %v302_v55 = vld [vmem:[%s562_s3 + $0xe8] sm:$0xff]  ;;  %v55_v56 = vld [vmem:[%s562_s3 + $0x60] sm:$0xff] }
   0xa   :  { %v28_v19 = vmul.f32 %v407_v15, %v407_v15  ;;  %v29_v20 = vmul.f32 %v409_v16, %v409_v16  ;;  %v164_v21 = vmul.f32 %v411_v17, %v411_v17  ;;  %v165_v22 = vmul.f32 %v413_v18, %v413_v18  ;;  %324 = vmatprep.subr.bf16.mxu0 %v323_v42  ;;  %v300_v53 = vld [vmem:[%s562_s3 + $0xd8] sm:$0xff]  ;;  %v57_v57 = vld [vmem:[%s562_s3 + $0x70] sm:$0xff]  ;;  %v301_v61 = vld [vmem:[%s562_s3 + $0xe0] sm:$0xff] }
   0xb   :  { %336 = vmatprep.subr.bf16.mxu1 %v335_v46  ;;  %v327_v54 = vpack.c.bf16 %v58_v52, %v56_v51  ;;  %v339_v58 = vpack.c.bf16 %v302_v55, %v300_v53  ;;  %v329_v59 = vpack.c.bf16 %v57_v57, %v55_v56  ;;  %v299_v60 = vld [vmem:[%s562_s3 + $0xd0] sm:$0xff]  ;;  %v60_v62 = vld [vmem:[%s562_s3 + $0x88] sm:$0xff]  ;;  %v304_v1 = vld [vmem:[%s562_s3 + $0xf8] sm:$0xff] }
   0xc   :  { %v31_v23 = vsel %vm30_vm0, %v28_v19, 0.0  ;;  %v34_v24 = vsel %vm30_vm0, %v29_v20, 0.0  ;;  %v166_v25 = vsel %vm30_vm0, %v164_v21, 0.0  ;;  %v169_v26 = vsel %vm30_vm0, %v165_v22, 0.0  ;;  %v306_v2 = vld [vmem:[%s562_s3 + $0x108] sm:$0xff]  ;;  %v303_v4 = vld [vmem:[%s562_s3 + $0xf0] sm:$0xff] }
   0xd   :  { %32 = vadd.xlane.f32.xlu0 %v31_v23  ;;  %35 = vadd.xlane.f32.xlu1 %v34_v24  ;;  %v341_v0 = vpack.c.bf16 %v301_v61, %v299_v60  ;;  %v343_v3 = vpack.c.bf16 %v306_v2, %v304_v1  ;;  %v305_v5 = vld [vmem:[%s562_s3 + $0x100] sm:$0xff]  ;;  %v308_v8 = vld [vmem:[%s562_s3 + $0x118] sm:$0xff]  ;;  %v307_v9 = vld [vmem:[%s562_s3 + $0x110] sm:$0xff] }
   0xe   :  { %326 = vmatpush1.bf16.msra.mxu0 %v325_v47  ;;  %338 = vmatpush1.bf16.msra.mxu1 %v337_v50  ;;  %v59_v6 = vld [vmem:[%s562_s3 + $0x80] sm:$0xff]  ;;  %v345_v7 = vpack.c.bf16 %v305_v5, %v303_v4  ;;  %v20_v12 = vld [vmem:[%s564_s2 + $0x8] sm:$0xff] }
   0xf   :  { %328 = vmatprep.subr.bf16.mxu0 %v327_v54  ;;  %340 = vmatprep.subr.bf16.mxu1 %v339_v58  ;;  %v19_v11 = vld [vmem:[%s564_s2] sm:$0xff] }
  0x11   :  { %167 = vadd.xlane.f32.xlu0 %v166_v25  ;;  %170 = vadd.xlane.f32.xlu1 %v169_v26 }
  0x12   :  { %330 = vmatpush1.bf16.msra.mxu0 %v329_v59  ;;  %342 = vmatpush1.bf16.msra.mxu1 %v341_v0 }
  0x13   :  { %93 = vmatprep.subr.mxu0 %v60_v62  ;;  %344 = vmatprep.subr.bf16.mxu1 %v343_v3 }
  0x16   :  { %94 = vmatpush1.msra.mxu0 %v59_v6  ;;  %346 = vmatpush1.bf16.msra.mxu1 %v345_v7 }
  0x17   :  { %219 = vmatprep.subr.mxu1 %v308_v8 }
  0x1a   :  { %220 = vmatpush1.msra.mxu1 %v307_v9 }
  0x22   :  { %68 = vperm.xlu1 %350, %v20_v12  }
  0x27   :  { %63 = vperm.xlu0 %349, %v19_v11  }
  0x9a   :  { %v33_v13 = vpop.xlane.xlu0 %32  ;;  %v36_v14 = vpop.xlane.xlu1 %35 }
  0x9b   :  { %v37_v19 = vadd.f32 1e-08, %v33_v13  ;;  %v38_v20 = vadd.f32 1e-08, %v36_v14 }
  0x9d   :  { %351 = vrsqrt.f32 %v37_v19 }
  0x9e   :  { %353 = vrsqrt.f32 %v38_v20  ;;  %v168_v21 = vpop.xlane.xlu0 %167  ;;  %v171_v22 = vpop.xlane.xlu1 %170 }
  0x9f   :  { %v172_v23 = vadd.f32 1e-08, %v168_v21  ;;  %v173_v24 = vadd.f32 1e-08, %v171_v22 }
  0xa1   :  { %355 = vrsqrt.f32 %v172_v23 }
  0xa2   :  { %357 = vrsqrt.f32 %v173_v24 }
  0xa6   :  { %v64_v33 = vpop.permute.xlu0 %63 }
  0xa7   :  { %v352_v25 = vpop.eup %351 }
  0xa8   :  { %v354_v26 = vpop.eup %353  ;;  %v41_v27 = vmul.f32 %v352_v25, %v407_v15 }
  0xa9   :  { %v42_v28 = vmul.f32 %v354_v26, %v409_v16  ;;  %v69_v16 = vpop.permute.xlu1 %68 }
  0xaa   :  { %289 = vmatmul.mubr.msk.f32.vlgmr.msra.gmra.mrb[0].mxu0 %vm30_vm0, %v41_v27 }
  0xab   :  { %v356_v29 = vpop.eup %355  ;;  %147 = vmatprep.mubr.f32.mxu0 %v359_v63 }
  0xac   :  { %v358_v30 = vpop.eup %357  ;;  %v176_v31 = vmul.f32 %v356_v29, %v411_v17 }
  0xad   :  { %v177_v32 = vmul.f32 %v358_v30, %v413_v18 }
  0xae   :  { %290 = vmatmul.mubr.msk.f32.gmra.mrb[2].mxu0 %vm30_vm0, %v42_v28  ;;  %309 = vmatmul.mubr.msk.f32.vlgmr.msra.gmra.mrb[0].mxu1 %vm30_vm0, %v176_v31 }
  0xaf   :  { %273 = vmatprep.mubr.f32.mxu1 %v359_v63 }
  0xb2   :  { %310 = vmatmul.mubr.msk.f32.gmra.mrb[2].mxu1 %vm30_vm0, %v177_v32 }
 0x17d   :  { %v143_v15 = vpop.f32.mrb[0].mxu0 }
 0x17e   :  { %v144_v34 = vadd.f32 %v143_v15, %v64_v33  ;;  %v145_v35 = vpop.f32.mrb[1].mxu0 }
 0x17f   :  { %v146_v36 = vadd.f32 %v145_v35, %v64_v33 }
 0x180   :  { %154 = vst [vmem:[%s565_s4] sm:$0xff] %v144_v34 }
 0x181   :  { %155 = vst [vmem:[%s565_s4 + $0x8] sm:$0xff] %v146_v36  ;;  %v149_v17 = vpop.f32.mrb[2].mxu0  ;;  %v269_v37 = vpop.f32.mrb[0].mxu1 }
 0x182   :  { %v150_v18 = vadd.f32 %v149_v17, %v69_v16  ;;  %v270_v38 = vadd.f32 %v269_v37, %v64_v33  ;;  %v151_v39 = vpop.f32.mrb[3].mxu0  ;;  %v271_v40 = vpop.f32.mrb[1].mxu1 }
 0x183   :  { %v152_v41 = vadd.f32 %v151_v39, %v69_v16  ;;  %v272_v42 = vadd.f32 %v271_v40, %v64_v33 }
 0x184   :  { %156 = vst [vmem:[%s565_s4 + $0x10] sm:$0xff] %v150_v18  ;;  %311 = vst [vmem:[%s565_s4 + $0x20] sm:$0xff] %v270_v38 }
 0x185   :  { %157 = vst [vmem:[%s565_s4 + $0x18] sm:$0xff] %v152_v41  ;;  %312 = vst [vmem:[%s565_s4 + $0x28] sm:$0xff] %v272_v42  ;;  %v275_v43 = vpop.f32.mrb[2].mxu1 }
 0x186   :  { %v276_v44 = vadd.f32 %v275_v43, %v69_v16  ;;  %v277_v45 = vpop.f32.mrb[3].mxu1 }
 0x187   :  { %v278_v46 = vadd.f32 %v277_v45, %v69_v16 }
 0x188   :  { %313 = vst [vmem:[%s565_s4 + $0x30] sm:$0xff] %v276_v44 }
 0x189   :  { %314 = vst [vmem:[%s565_s4 + $0x38] sm:$0xff] %v278_v46 }

</bundles_post_ra>
